<compile_context>
chip_gen: v7x
topology: tpu7x:2x2x1
jax: 0.10.0
libtpu: 0.0.40
codegen_flags: <defaults>
</compile_context>

<pallas_src>
import functools
import numpy as np
import jax
import jax.numpy as jnp
from jax.experimental import pallas as pl
from jax.experimental.pallas import tpu as pltpu

MAX_LOG_STD = 2.0
MIN_LOG_STD = -20.0


def _round_up(x, m):
    return ((x + m - 1) // m) * m


def _policy_kernel(x_ref, w1_ref, b1_ref, w2_ref, b2_ref,
                   wh_ref, bh_ref, eps_ref, out_ref, *, num_actions):
    A = num_actions

    # --- MLP trunk: Linear -> ReLU -> Linear -> ReLU (output_activation == activation) ---
    x = x_ref[...]
    h1 = jnp.dot(x, w1_ref[...], preferred_element_type=jnp.float32) + b1_ref[...]
    h1 = jnp.maximum(h1, 0.0)
    h2 = jnp.dot(h1, w2_ref[...], preferred_element_type=jnp.float32) + b2_ref[...]
    h2 = jnp.maximum(h2, 0.0)

    # --- fused heads: one matmul producing [TB, 2A] = [mu | log_std] ---
    heads = jnp.dot(h2, wh_ref[...], preferred_element_type=jnp.float32) + bh_ref[...]
    mu = heads[:, :A]
    log_std = jnp.clip(heads[:, A:], MIN_LOG_STD, MAX_LOG_STD)
    std = jnp.exp(log_std)

    # --- rsample(): a = mu + std * eps, eps ~ N(0, 1) supplied from the host ---
    # TODO(synk): could generate eps on-chip with pltpu.prng_seed/stateful_normal to
    # drop one input DMA; kept host-supplied to preserve bit-exact reference semantics.
    eps = eps_ref[...]
    a = mu + std * eps

    # --- Normal(mu, std).log_prob(a): (a - mu)/std == eps exactly, so use eps ---
    log_prob = -0.5 * eps * eps - log_std - 0.5 * jnp.log(2.0 * jnp.pi)

    # --- tanh-squash correction: 2*(log(2) - a - softplus(-2a)) ---
    neg2a = -2.0 * a
    softplus = jnp.maximum(neg2a, 0.0) + jnp.log1p(jnp.exp(-jnp.abs(neg2a)))
    corr = 2.0 * (jnp.log(2.0) - a - softplus)

    # single cross-lane reduction for both terms
    logp = jnp.sum(log_prob - corr, axis=-1, keepdims=True)

    # --- packed output: [action | logp] into one VMEM buffer / one writeback DMA ---
    out_ref[:, :A] = jnp.tanh(a)
    out_ref[:, A:A + 1] = logp


def gaussian_policy_forward(state, params, eps, *, block_b=256):
    """Full forward pass (deterministic=False, with_logprob=True)."""
    B, D_in = state.shape
    H1 = params["w1"].shape[1]
    H2 = params["w2"].shape[1]
    A = params["w_mu"].shape[1]

    # Fuse the two head layers into a single [H2, 2A] matmul.
    w_heads = jnp.concatenate([params["w_mu"], params["w_std"]], axis=1)  # [H2, 2A]
    b_heads = jnp.concatenate([params["b_mu"], params["b_std"]], axis=1)  # [1, 2A]

    # Batch tile: large enough to fill MXU rows for big batches; pad B up to a
    # multiple of the tile (sublane multiple of 8) for small batches.
    tb = min(block_b, _round_up(B, 8))
    Bp = _round_up(B, tb)
    if Bp != B:
        state = jnp.pad(state, ((0, Bp - B), (0, 0)))
        eps = jnp.pad(eps, ((0, Bp - B), (0, 0)))
    grid = (Bp // tb,)

    kernel = functools.partial(_policy_kernel, num_actions=A)

    # Cost hint for the XLA scheduler.
    flops = 2 * Bp * (D_in * H1 + H1 * H2 + H2 * 2 * A) + 12 * Bp * A
    transcendentals = 4 * Bp * A
    bytes_accessed = 4 * (Bp * D_in + Bp * A + Bp * (A + 1)
                          + D_in * H1 + H1 + H1 * H2 + H2 + H2 * 2 * A + 2 * A)

    out = pl.pallas_call(
        kernel,
        out_shape=jax.ShapeDtypeStruct((Bp, A + 1), jnp.float32),
        grid=grid,
        in_specs=[
            pl.BlockSpec((tb, D_in), lambda i: (i, 0)),        # state tile
            pl.BlockSpec((D_in, H1), lambda i: (0, 0)),        # w1 (resident)
            pl.BlockSpec((1, H1), lambda i: (0, 0)),           # b1 (resident)
            pl.BlockSpec((H1, H2), lambda i: (0, 0)),          # w2 (resident)
            pl.BlockSpec((1, H2), lambda i: (0, 0)),           # b2 (resident)
            pl.BlockSpec((H2, 2 * A), lambda i: (0, 0)),       # fused head W (resident)
            pl.BlockSpec((1, 2 * A), lambda i: (0, 0)),        # fused head b (resident)
            pl.BlockSpec((tb, A), lambda i: (i, 0)),           # eps tile
        ],
        out_specs=pl.BlockSpec((tb, A + 1), lambda i: (i, 0)),
        compiler_params=pltpu.CompilerParams(
            dimension_semantics=("parallel",)),
        cost_estimate=pl.CostEstimate(
            flops=flops,
            transcendentals=transcendentals,
            bytes_accessed=bytes_accessed),
    )(state, params["w1"], params["b1"], params["w2"], params["b2"],
      w_heads, b_heads, eps)

    out = out[:B]
    pi_action = out[:, :A]
    logp_pi = out[:, A]
    return pi_action, logp_pi


def _reference_forward(state, params, eps):
    """Pure-JAX reference matching the PyTorch module (stochastic, with logprob)."""
    h1 = jax.nn.relu(state @ params["w1"] + params["b1"])
    h2 = jax.nn.relu(h1 @ params["w2"] + params["b2"])
    mu = h2 @ params["w_mu"] + params["b_mu"]
    log_std = jnp.clip(h2 @ params["w_std"] + params["b_std"], MIN_LOG_STD, MAX_LOG_STD)
    std = jnp.exp(log_std)
    a = mu + std * eps
    logp = jnp.sum(-0.5 * eps * eps - log_std - 0.5 * jnp.log(2.0 * jnp.pi), axis=-1)
    logp = logp - jnp.sum(2.0 * (jnp.log(2.0) - a - jax.nn.softplus(-2.0 * a)), axis=-1)
    return jnp.tanh(a), logp


def init_params(key, input_size, output_size, hidden_sizes):
    """Deterministic init mimicking nn.Linear's U(-1/sqrt(fan_in), 1/sqrt(fan_in))."""
    sizes = [input_size] + list(hidden_sizes)
    params = {}
    keys = jax.random.split(key, 2 * (len(sizes) - 1) + 4)
    ki = 0

    def linear(kw, kb, fan_in, fan_out):
        bound = 1.0 / np.sqrt(fan_in)
        w = jax.random.uniform(kw, (fan_in, fan_out), jnp.float32, -bound, bound)
        b = jax.random.uniform(kb, (1, fan_out), jnp.float32, -bound, bound)
        return w, b

    params["w1"], params["b1"] = linear(keys[ki], keys[ki + 1], sizes[0], sizes[1]); ki += 2
    params["w2"], params["b2"] = linear(keys[ki], keys[ki + 1], sizes[1], sizes[2]); ki += 2
    params["w_mu"], params["b_mu"] = linear(keys[ki], keys[ki + 1], sizes[-1], output_size); ki += 2
    params["w_std"], params["b_std"] = linear(keys[ki], keys[ki + 1], sizes[-1], output_size); ki += 2
    return params


if __name__ == "__main__":
    B, D_IN, A = 8, 16, 8
    HIDDEN = (128, 128)

    key = jax.random.PRNGKey(0)
    k_params, k_state, k_eps = jax.random.split(key, 3)

    params = init_params(k_params, D_IN, A, HIDDEN)
    state = jax.random.normal(k_state, (B, D_IN), dtype=jnp.float32)
    eps = jax.random.normal(k_eps, (B, A), dtype=jnp.float32)

    pi_action, logp_pi = jax.jit(gaussian_policy_forward)(state, params, eps)
    jax.block_until_ready((pi_action, logp_pi))

    ref_action, ref_logp = _reference_forward(state, params, eps)

    assert pi_action.shape == (B, A)
    assert logp_pi.shape == (B,)
    assert bool(jnp.all(jnp.isfinite(pi_action))) and bool(jnp.all(jnp.isfinite(logp_pi)))
    assert bool(jnp.allclose(pi_action, ref_action, rtol=1e-5, atol=1e-5))
    assert bool(jnp.allclose(logp_pi, ref_logp, rtol=1e-4, atol=1e-4))
    print("KERNEL_OK")
</pallas_src>

<mosaic_0001>
module attributes {stable_mosaic.version = 11 : i64} {
  func.func @_policy_kernel(%arg0: i32, %arg1: memref<8x16xf32, #tpu.memory_space<vmem>>, %arg2: memref<16x128xf32, #tpu.memory_space<vmem>>, %arg3: memref<1x128xf32, #tpu.memory_space<vmem>>, %arg4: memref<128x128xf32, #tpu.memory_space<vmem>>, %arg5: memref<1x128xf32, #tpu.memory_space<vmem>>, %arg6: memref<128x16xf32, #tpu.memory_space<vmem>>, %arg7: memref<1x16xf32, #tpu.memory_space<vmem>>, %arg8: memref<8x8xf32, #tpu.memory_space<vmem>>, %arg9: memref<8x9xf32, #tpu.memory_space<vmem>>) attributes {dimension_semantics = [#tpu.dimension_semantics<parallel>], iteration_bounds = array<i64: 1>, scalar_prefetch = 0 : i64, scratch_operands = 0 : i64, tpu.core_type = #tpu.core_type<tc>, window_params = [{transform_indices = @transform_0, window_bounds = array<i64: 8, 16>}, {pipeline_mode = #tpu.pipeline_mode<synchronous>, transform_indices = @transform_1, window_bounds = array<i64: 16, 128>}, {pipeline_mode = #tpu.pipeline_mode<synchronous>, transform_indices = @transform_2, window_bounds = array<i64: 1, 128>}, {pipeline_mode = #tpu.pipeline_mode<synchronous>, transform_indices = @transform_3, window_bounds = array<i64: 128, 128>}, {pipeline_mode = #tpu.pipeline_mode<synchronous>, transform_indices = @transform_4, window_bounds = array<i64: 1, 128>}, {pipeline_mode = #tpu.pipeline_mode<synchronous>, transform_indices = @transform_5, window_bounds = array<i64: 128, 16>}, {pipeline_mode = #tpu.pipeline_mode<synchronous>, transform_indices = @transform_6, window_bounds = array<i64: 1, 16>}, {transform_indices = @transform_7, window_bounds = array<i64: 8, 8>}, {transform_indices = @transform_8, window_bounds = array<i64: 8, 9>}]} {
    %c0 = arith.constant 0 : index
    %c0_0 = arith.constant 0 : index
    %0 = vector.load %arg1[%c0, %c0_0] : memref<8x16xf32, #tpu.memory_space<vmem>>, vector<8x16xf32>
    %c0_1 = arith.constant 0 : index
    %c0_2 = arith.constant 0 : index
    %1 = vector.load %arg2[%c0_1, %c0_2] : memref<16x128xf32, #tpu.memory_space<vmem>>, vector<16x128xf32>
    %cst = arith.constant dense<0.000000e+00> : vector<8x128xf32>
    %2 = tpu.matmul %0, %1, %cst {dimension_numbers = #tpu.dot_dimension_numbers<[1], [0], [0], [1], [0, 0, 1, 1], [], []>} : vector<8x16xf32>, vector<16x128xf32>, vector<8x128xf32> -> vector<8x128xf32>
    %c0_3 = arith.constant 0 : index
    %c0_4 = arith.constant 0 : index
    %3 = vector.load %arg3[%c0_3, %c0_4] : memref<1x128xf32, #tpu.memory_space<vmem>>, vector<1x128xf32>
    %4 = vector.broadcast %3 : vector<1x128xf32> to vector<8x128xf32>
    %5 = arith.addf %2, %4 : vector<8x128xf32>
    %cst_5 = arith.constant 0.000000e+00 : f32
    %6 = vector.broadcast %cst_5 : f32 to vector<8x128xf32>
    %7 = arith.maximumf %5, %6 : vector<8x128xf32>
    %c0_6 = arith.constant 0 : index
    %c0_7 = arith.constant 0 : index
    %8 = vector.load %arg4[%c0_6, %c0_7] : memref<128x128xf32, #tpu.memory_space<vmem>>, vector<128x128xf32>
    %cst_8 = arith.constant dense<0.000000e+00> : vector<8x128xf32>
    %9 = tpu.matmul %7, %8, %cst_8 {dimension_numbers = #tpu.dot_dimension_numbers<[1], [0], [0], [1], [0, 0, 1, 1], [], []>} : vector<8x128xf32>, vector<128x128xf32>, vector<8x128xf32> -> vector<8x128xf32>
    %c0_9 = arith.constant 0 : index
    %c0_10 = arith.constant 0 : index
    %10 = vector.load %arg5[%c0_9, %c0_10] : memref<1x128xf32, #tpu.memory_space<vmem>>, vector<1x128xf32>
    %11 = vector.broadcast %10 : vector<1x128xf32> to vector<8x128xf32>
    %12 = arith.addf %9, %11 : vector<8x128xf32>
    %cst_11 = arith.constant 0.000000e+00 : f32
    %13 = vector.broadcast %cst_11 : f32 to vector<8x128xf32>
    %14 = arith.maximumf %12, %13 : vector<8x128xf32>
    %c0_12 = arith.constant 0 : index
    %c0_13 = arith.constant 0 : index
    %15 = vector.load %arg6[%c0_12, %c0_13] : memref<128x16xf32, #tpu.memory_space<vmem>>, vector<128x16xf32>
    %cst_14 = arith.constant dense<0.000000e+00> : vector<8x16xf32>
    %16 = tpu.matmul %14, %15, %cst_14 {dimension_numbers = #tpu.dot_dimension_numbers<[1], [0], [0], [1], [0, 0, 1, 1], [], []>} : vector<8x128xf32>, vector<128x16xf32>, vector<8x16xf32> -> vector<8x16xf32>
    %c0_15 = arith.constant 0 : index
    %c0_16 = arith.constant 0 : index
    %17 = vector.load %arg7[%c0_15, %c0_16] : memref<1x16xf32, #tpu.memory_space<vmem>>, vector<1x16xf32>
    %18 = vector.broadcast %17 : vector<1x16xf32> to vector<8x16xf32>
    %19 = arith.addf %16, %18 : vector<8x16xf32>
    %20 = vector.extract_strided_slice %19 {offsets = [0, 0], sizes = [8, 8], strides = [1, 1]} : vector<8x16xf32> to vector<8x8xf32>
    %21 = vector.extract_strided_slice %19 {offsets = [0, 8], sizes = [8, 8], strides = [1, 1]} : vector<8x16xf32> to vector<8x8xf32>
    %cst_17 = arith.constant -2.000000e+01 : f32
    %cst_18 = arith.constant 2.000000e+00 : f32
    %22 = vector.broadcast %cst_17 : f32 to vector<8x8xf32>
    %23 = arith.maximumf %22, %21 : vector<8x8xf32>
    %24 = vector.broadcast %cst_18 : f32 to vector<8x8xf32>
    %25 = arith.minimumf %24, %23 : vector<8x8xf32>
    %26 = math.exp %25 : vector<8x8xf32>
    %c0_19 = arith.constant 0 : index
    %c0_20 = arith.constant 0 : index
    %27 = vector.load %arg8[%c0_19, %c0_20] : memref<8x8xf32, #tpu.memory_space<vmem>>, vector<8x8xf32>
    %28 = arith.mulf %26, %27 : vector<8x8xf32>
    %29 = arith.addf %20, %28 : vector<8x8xf32>
    %cst_21 = arith.constant -5.000000e-01 : f32
    %30 = vector.broadcast %cst_21 : f32 to vector<8x8xf32>
    %31 = arith.mulf %30, %27 : vector<8x8xf32>
    %32 = arith.mulf %31, %27 : vector<8x8xf32>
    %33 = arith.subf %32, %25 : vector<8x8xf32>
    %cst_22 = arith.constant 6.28318548 : f32
    %34 = math.log %cst_22 : f32
    %cst_23 = arith.constant 5.000000e-01 : f32
    %35 = arith.mulf %cst_23, %34 : f32
    %36 = vector.broadcast %35 : f32 to vector<8x8xf32>
    %37 = arith.subf %33, %36 : vector<8x8xf32>
    %cst_24 = arith.constant -2.000000e+00 : f32
    %38 = vector.broadcast %cst_24 : f32 to vector<8x8xf32>
    %39 = arith.mulf %38, %29 : vector<8x8xf32>
    %cst_25 = arith.constant 0.000000e+00 : f32
    %40 = vector.broadcast %cst_25 : f32 to vector<8x8xf32>
    %41 = arith.maximumf %39, %40 : vector<8x8xf32>
    %42 = math.absf %39 : vector<8x8xf32>
    %cst_26 = arith.constant 0.000000e+00 : f32
    %43 = vector.broadcast %cst_26 : f32 to vector<8x8xf32>
    %44 = arith.subf %43, %42 : vector<8x8xf32>
    %45 = math.exp %44 : vector<8x8xf32>
    %46 = math.log1p %45 : vector<8x8xf32>
    %47 = arith.addf %41, %46 : vector<8x8xf32>
    %cst_27 = arith.constant 2.000000e+00 : f32
    %48 = math.log %cst_27 : f32
    %49 = vector.broadcast %48 : f32 to vector<8x8xf32>
    %50 = arith.subf %49, %29 : vector<8x8xf32>
    %51 = arith.subf %50, %47 : vector<8x8xf32>
    %cst_28 = arith.constant 2.000000e+00 : f32
    %52 = vector.broadcast %cst_28 : f32 to vector<8x8xf32>
    %53 = arith.mulf %52, %51 : vector<8x8xf32>
    %54 = arith.subf %37, %53 : vector<8x8xf32>
    %cst_29 = arith.constant dense<0.000000e+00> : vector<8xf32>
    %55 = vector.multi_reduction <add>, %54, %cst_29 [1] : vector<8x8xf32> to vector<8xf32>
    %56 = vector.shape_cast %55 : vector<8xf32> to vector<8x1xf32>
    %57 = math.tanh %29 : vector<8x8xf32>
    %c0_30 = arith.constant 0 : index
    %c0_31 = arith.constant 0 : index
    %58 = vector.load %arg9[%c0_30, %c0_31] : memref<8x9xf32, #tpu.memory_space<vmem>>, vector<8x8xf32>
    tpu.vector_store %arg9[%c0_30, %c0_31], %57 {strides = array<i32>} : memref<8x9xf32, #tpu.memory_space<vmem>>, vector<8x8xf32>,
    %c0_32 = arith.constant 0 : index
    %c8 = arith.constant 8 : index
    %59 = vector.load %arg9[%c0_32, %c8] : memref<8x9xf32, #tpu.memory_space<vmem>>, vector<8x1xf32>
    tpu.vector_store %arg9[%c0_32, %c8], %56 {strides = array<i32>} : memref<8x9xf32, #tpu.memory_space<vmem>>, vector<8x1xf32>,
    return
  }
  func.func @transform_0(%arg0: i32) -> (i32, i32) {
    %c0_i32 = arith.constant 0 : i32
    %c0_i32_0 = arith.constant 0 : i32
    return %arg0, %c0_i32 : i32, i32
  }
  func.func @transform_1(%arg0: i32) -> (i32, i32) {
    %c0_i32 = arith.constant 0 : i32
    %c0_i32_0 = arith.constant 0 : i32
    %c0_i32_1 = arith.constant 0 : i32
    return %c0_i32, %c0_i32_0 : i32, i32
  }
  func.func @transform_2(%arg0: i32) -> (i32, i32) {
    %c0_i32 = arith.constant 0 : i32
    %c0_i32_0 = arith.constant 0 : i32
    %c0_i32_1 = arith.constant 0 : i32
    return %c0_i32, %c0_i32_0 : i32, i32
  }
  func.func @transform_3(%arg0: i32) -> (i32, i32) {
    %c0_i32 = arith.constant 0 : i32
    %c0_i32_0 = arith.constant 0 : i32
    %c0_i32_1 = arith.constant 0 : i32
    return %c0_i32, %c0_i32_0 : i32, i32
  }
  func.func @transform_4(%arg0: i32) -> (i32, i32) {
    %c0_i32 = arith.constant 0 : i32
    %c0_i32_0 = arith.constant 0 : i32
    %c0_i32_1 = arith.constant 0 : i32
    return %c0_i32, %c0_i32_0 : i32, i32
  }
  func.func @transform_5(%arg0: i32) -> (i32, i32) {
    %c0_i32 = arith.constant 0 : i32
    %c0_i32_0 = arith.constant 0 : i32
    %c0_i32_1 = arith.constant 0 : i32
    return %c0_i32, %c0_i32_0 : i32, i32
  }
  func.func @transform_6(%arg0: i32) -> (i32, i32) {
    %c0_i32 = arith.constant 0 : i32
    %c0_i32_0 = arith.constant 0 : i32
    %c0_i32_1 = arith.constant 0 : i32
    return %c0_i32, %c0_i32_0 : i32, i32
  }
  func.func @transform_7(%arg0: i32) -> (i32, i32) {
    %c0_i32 = arith.constant 0 : i32
    %c0_i32_0 = arith.constant 0 : i32
    return %arg0, %c0_i32 : i32, i32
  }
  func.func @transform_8(%arg0: i32) -> (i32, i32) {
    %c0_i32 = arith.constant 0 : i32
    %c0_i32_0 = arith.constant 0 : i32
    return %arg0, %c0_i32 : i32, i32
  }
}

</mosaic_0001>

<bundles_post_ra>
// kernel: gaussian_policy_forward.1
= control target key start
LH: loop header
LB: loop body
LE: loop exit
PB: predicated region body
PF: predicated region fallthrough
CT: control target
= control target key end

     0   :  { %v539_v0 = vmov 0.0|0.0   ;;  %vm540_vm0 = vmmov 0   ;;  %v541_v3 = vmov 0.0   ;;  %vm39_vm1 = vcmask 130048   ;;  %s734_s1 = inlined_call_operand.vmem [shape: f32[16,128], index: 1, kind: input, shape index: {}]   ;;  %s735_s3 = inlined_call_operand.vmem [shape: f32[128,128], index: 3, kind: input, shape index: {}]   ;;  %s736_s0 = inlined_call_operand.vmem [shape: f32[8,16], index: 0, kind: input, shape index: {}]   ;;  %s737_s5 = inlined_call_operand.vmem [shape: f32[128,16], index: 5, kind: input, shape index: {}]   ;;  %s738_s2 = inlined_call_operand.vmem [shape: f32[1,128], index: 2, kind: input, shape index: {}]   ;;  %s739_s7 = inlined_call_operand.vmem [shape: f32[8,8], index: 7, kind: input, shape index: {}]   ;;  %s740_s4 = inlined_call_operand.vmem [shape: f32[1,128], index: 4, kind: input, shape index: {}]   ;;  %s741_s6 = inlined_call_operand.vmem [shape: f32[1,16], index: 6, kind: input, shape index: {}]   ;;  %s742_s8 = inlined_call_operand.vmem [shape: f32[8,9], index: 8, kind: output, shape index: {}]  }
   0x1   :  { %475 = vmatprep.subr.bf16.mxu0 %v539_v0  ;;  %v30_v1 = vld [vmem:[%s734_s1] sm:$0xff]  ;;  %v31_v2 = vld [vmem:[%s734_s1 + $0x8] sm:$0xff]  ;;  %402 = vmatprep.mubr.msk.f32.mxu0 %vm540_vm0, %v541_v3  ;;  %v116_v7 = vld [vmem:[%s735_s3 + $0x10] sm:$0xff]  ;;  %vm344_vm2 = vcmask 64512   ;;  %vm350_vm4 = vcmask 72768  }
   0x2   :  { %v476_v4 = vpack.c.bf16 %v31_v2, %v30_v1  ;;  %478 = vmatprep.subr.bf16.mxu1 %v539_v0  ;;  %v114_v5 = vld [vmem:[%s735_s3] sm:$0xff]  ;;  %v115_v6 = vld [vmem:[%s735_s3 + $0x8] sm:$0xff]  ;;  %437 = vmatprep.mubr.msk.f32.mxu1 %vm540_vm0, %v541_v3  ;;  %v117_v9 = vld [vmem:[%s735_s3 + $0x18] sm:$0xff] }
   0x3   :  { %v479_v8 = vpack.c.bf16 %v115_v6, %v114_v5  ;;  %v29_v10 = vld [vmem:[%s736_s0] sm:$0xff]  ;;  %v482_v11 = vpack.c.bf16 %v117_v9, %v116_v7  ;;  %v119_v13 = vld [vmem:[%s735_s3 + $0x28] sm:$0xff]  ;;  %v120_v15 = vld [vmem:[%s735_s3 + $0x30] sm:$0xff] }
   0x4   :  { %477 = vmatpush3.bf16.msra.mxu0 %v476_v4  ;;  %v118_v12 = vld [vmem:[%s735_s3 + $0x20] sm:$0xff]  ;;  %v121_v16 = vld [vmem:[%s735_s3 + $0x38] sm:$0xff]  ;;  %v123_v19 = vld [vmem:[%s735_s3 + $0x48] sm:$0xff] }
   0x5   :  { %480 = vmatpush3.bf16.msra.mxu1 %v479_v8  ;;  %502 = vmatprep.subr.bf16.mxu0 %v539_v0  ;;  %v485_v14 = vpack.c.bf16 %v119_v13, %v118_v12  ;;  %v488_v17 = vpack.c.bf16 %v121_v16, %v120_v15  ;;  %v122_v18 = vld [vmem:[%s735_s3 + $0x40] sm:$0xff]  ;;  %v124_v21 = vld [vmem:[%s735_s3 + $0x50] sm:$0xff]  ;;  %v125_v22 = vld [vmem:[%s735_s3 + $0x58] sm:$0xff] }
   0x6   :  { %481 = vmatprep.subr.bf16.mxu1 %v539_v0  ;;  %v491_v20 = vpack.c.bf16 %v123_v19, %v122_v18  ;;  %v494_v23 = vpack.c.bf16 %v125_v22, %v124_v21  ;;  %v126_v24 = vld [vmem:[%s735_s3 + $0x60] sm:$0xff]  ;;  %v127_v25 = vld [vmem:[%s735_s3 + $0x68] sm:$0xff]  ;;  %v128_v27 = vld [vmem:[%s735_s3 + $0x70] sm:$0xff] }
   0x7   :  { %403 = vmatmul.mubr.msk.f32.vlgmr.msra.gmra.mrb[0].mxu0 %vm39_vm1, %v29_v10  ;;  %v497_v26 = vpack.c.bf16 %v127_v25, %v126_v24  ;;  %v129_v28 = vld [vmem:[%s735_s3 + $0x78] sm:$0xff]  ;;  %v208_v30 = vld [vmem:[%s737_s5] sm:$0xff]  ;;  %v209_v31 = vld [vmem:[%s737_s5 + $0x8] sm:$0xff] }
   0x8   :  { %472 = vmatprep.mubr.msk.f32.mxu0 %vm540_vm0, %v541_v3  ;;  %v500_v29 = vpack.c.bf16 %v129_v28, %v128_v27  ;;  %v210_v32 = vld [vmem:[%s737_s5 + $0x10] sm:$0xff]  ;;  %v503_v33 = vpack.c.bf16 %v209_v31, %v208_v30  ;;  %v211_v34 = vld [vmem:[%s737_s5 + $0x18] sm:$0xff]  ;;  %v212_v36 = vld [vmem:[%s737_s5 + $0x20] sm:$0xff] }
   0x9   :  { %483 = vmatpush3.bf16.msra.mxu1 %v482_v11  ;;  %v506_v35 = vpack.c.bf16 %v211_v34, %v210_v32  ;;  %v213_v37 = vld [vmem:[%s737_s5 + $0x28] sm:$0xff]  ;;  %v214_v39 = vld [vmem:[%s737_s5 + $0x30] sm:$0xff]  ;;  %v215_v40 = vld [vmem:[%s737_s5 + $0x38] sm:$0xff] }
   0xa   :  { %484 = vmatprep.subr.bf16.mxu1 %v539_v0  ;;  %504 = vmatpush3.bf16.msra.mxu0 %v503_v33  ;;  %v509_v38 = vpack.c.bf16 %v213_v37, %v212_v36  ;;  %v512_v41 = vpack.c.bf16 %v215_v40, %v214_v39  ;;  %v216_v42 = vld [vmem:[%s737_s5 + $0x40] sm:$0xff]  ;;  %v217_v43 = vld [vmem:[%s737_s5 + $0x48] sm:$0xff]  ;;  %v218_v45 = vld [vmem:[%s737_s5 + $0x50] sm:$0xff] }
   0xb   :  { %505 = vmatprep.subr.bf16.mxu0 %v539_v0  ;;  %v515_v44 = vpack.c.bf16 %v217_v43, %v216_v42  ;;  %v219_v46 = vld [vmem:[%s737_s5 + $0x58] sm:$0xff]  ;;  %v220_v48 = vld [vmem:[%s737_s5 + $0x60] sm:$0xff]  ;;  %v221_v49 = vld [vmem:[%s737_s5 + $0x68] sm:$0xff] }
   0xc   :  { %v518_v47 = vpack.c.bf16 %v219_v46, %v218_v45  ;;  %v521_v50 = vpack.c.bf16 %v221_v49, %v220_v48  ;;  %v356_v51 = vld [vmem:[%s738_s2] ss:$0 sm:$0xff]  ;;  %v222_v56 = vld [vmem:[%s737_s5 + $0x70] sm:$0xff]  ;;  %v223_v57 = vld [vmem:[%s737_s5 + $0x78] sm:$0xff]  ;;  %s542_s2 = smov 8   ;;  %s543_s5 = smov 120  }
   0xd   :  { %486 = vmatpush3.bf16.msra.mxu1 %v485_v14  ;;  %v524_v58 = vpack.c.bf16 %v223_v57, %v222_v56  ;;  %v305_v59 = vld [vmem:[%s739_s7] sm:$0xff] }
   0xe   :  { %487 = vmatprep.subr.bf16.mxu1 %v539_v0  ;;  %507 = vmatpush3.bf16.msra.mxu0 %v506_v35  ;;  %v358_v60 = vld [vmem:[%s740_s4] ss:$0 sm:$0xff]  ;;  %v316_v21 = vmul.f32 -0.5, %v305_v59 }
   0xf   :  { %508 = vmatprep.subr.bf16.mxu0 %v539_v0  ;;  %307 = vrot.lane.b32.xlu0 %v305_v59, %s542_s2  ;;  %v359_v1 = vld [vmem:[%s741_s6] ss:$0 sm:$0xff] }
  0x10   :  { %v317_v25 = vmul.f32 %v316_v21, %v305_v59 }
  0x11   :  { %489 = vmatpush3.bf16.msra.mxu1 %v488_v17 }
  0x12   :  { %490 = vmatprep.subr.bf16.mxu1 %v539_v0  ;;  %510 = vmatpush3.bf16.msra.mxu0 %v509_v38 }
  0x13   :  { %511 = vmatprep.subr.bf16.mxu0 %v539_v0 }
  0x15   :  { %492 = vmatpush3.bf16.msra.mxu1 %v491_v20 }
  0x16   :  { %493 = vmatprep.subr.bf16.mxu1 %v539_v0  ;;  %513 = vmatpush3.bf16.msra.mxu0 %v512_v41 }
  0x17   :  { %514 = vmatprep.subr.bf16.mxu0 %v539_v0 }
  0x19   :  { %495 = vmatpush3.bf16.msra.mxu1 %v494_v23 }
  0x1a   :  { %496 = vmatprep.subr.bf16.mxu1 %v539_v0  ;;  %516 = vmatpush3.bf16.msra.mxu0 %v515_v44 }
  0x1b   :  { %517 = vmatprep.subr.bf16.mxu0 %v539_v0 }
  0x1d   :  { %498 = vmatpush3.bf16.msra.mxu1 %v497_v26 }
  0x1e   :  { %499 = vmatprep.subr.bf16.mxu1 %v539_v0  ;;  %519 = vmatpush3.bf16.msra.mxu0 %v518_v47 }
  0x1f   :  { %520 = vmatprep.subr.bf16.mxu0 %v539_v0 }
  0x21   :  { %501 = vmatpush3.bf16.msra.mxu1 %v500_v29 }
  0x22   :  { %522 = vmatpush3.bf16.msra.mxu0 %v521_v50 }
  0x23   :  { %523 = vmatprep.subr.bf16.mxu0 %v539_v0 }
  0x26   :  { %525 = vmatpush3.bf16.msra.mxu0 %v524_v58 }
  0x81   :  { %v308_v8 = vpop.permute.xlu0 %307 }
  0xda   :  { %v109_v52 = vpop.f32.mrb[0].mxu0 }
  0xdb   :  { %v110_v53 = vadd.f32 %v356_v51, %v109_v52  ;;  %v404_v54 = vpop.f32.mrb[1].mxu0 }
  0xdd   :  { %v113_v55 = vmax.f32 %v110_v53, 0.0 }
  0xdf   :  { %438 = vmatmul.mubr.f32.vlgmr.msra.gmra.mrb[0].mxu1 %v113_v55 }
 0x1b2   :  { %v203_v61 = vpop.f32.mrb[0].mxu1 }
 0x1b3   :  { %v204_v62 = vadd.f32 %v358_v60, %v203_v61  ;;  %v439_v63 = vpop.f32.mrb[1].mxu1 }
 0x1b5   :  { %v207_v0 = vmax.f32 %v204_v62, 0.0 }
 0x1b7   :  { %473 = vmatmul.mubr.f32.vlgmr.msra.gmra.mrb[2].mxu0 %v207_v0 }
 0x28a   :  { %v297_v2 = vpop.f32.mrb[2].mxu0 }
 0x28b   :  { %v298_v3 = vadd.f32 %v359_v1, %v297_v2  ;;  %v474_v4 = vpop.f32.mrb[3].mxu0 }
 0x28d   :  { %v301_v5 = vmax.f32 %v298_v3, -20.0 }
 0x28f   :  { %v302_v6 = vmin.f32 %v301_v5, 2.0 }
 0x291   :  { %319 = vrot.lane.b32.xlu1 %v302_v6, %s543_s5  ;;  %v303_v7 = vmul.f32 1.442695, %v302_v6 }
 0x293   :  { %531 = vpow2.f32 %v303_v7 }
 0x29d   :  { %v532_v9 = vpop.eup %531 }
 0x29e   :  { %v310_v10 = vmul.f32 %v532_v9, %v308_v8 }
 0x2a0   :  { %312 = vrot.lane.b32.xlu0 %v310_v10, %s543_s5 }
 0x303   :  { %v320_v26 = vpop.permute.xlu1 %319 }
 0x304   :  { %v322_v31 = vsub.f32 %v317_v25, %v320_v26 }
 0x306   :  { %v360_v35 = vadd.f32 -0.9189385, %v322_v31 }
 0x312   :  { %v313_v11 = vpop.permute.xlu0 %312 }
 0x313   :  { %v315_v12 = vadd.f32 %v313_v11, %v298_v3 }
 0x315   :  { %v324_v13 = vmul.f32 -2.0, %v315_v12  ;;  %533 = vtanh.f32 %v315_v12  ;;  %v340_v32 = vsub.f32 0.6931472, %v315_v12 }
 0x317   :  { %v326_v14 = vand.u32 2147483647, %v324_v13  ;;  %v325_v29 = vmax.f32 %v324_v13, 0.0 }
 0x319   :  { %v327_v15 = vsub.f32 0.0, %v326_v14 }
 0x31b   :  { %v328_v16 = vmul.f32 1.442695, %v327_v15 }
 0x31d   :  { %535 = vpow2.f32 %v328_v16 }
 0x31f   :  { %v534_v17 = vpop.eup %533 }
 0x320   :  { %349 = vst.msk [vmem:[%s742_s8] sm:$0xff] %vm344_vm2, %v534_v17 }
 0x327   :  { %v536_v18 = vpop.eup %535 }
 0x328   :  { %v330_v19 = vadd.f32 1.0, %v536_v18  ;;  %v333_v20 = vmul.f32 -0.5, %v536_v18  ;;  %v336_v23 = vand.u32 2147483647, %v536_v18 }
 0x32a   :  { %537 = vlog2.f32 %v330_v19  ;;  %v334_v22 = vadd.f32 1.0, %v333_v20  ;;  %vm337_vm3 = vcmp.lt.f32.partialorder %v336_v23, 0.0004427343 }
 0x32c   :  { %v335_v28 = vmul.f32 %v536_v18, %v334_v22 }
 0x334   :  { %v538_v24 = vpop.eup %537 }
 0x335   :  { %v332_v27 = vmul.f32 0.6931472, %v538_v24 }
 0x337   :  { %v338_v30 = vsel %vm337_vm3, %v335_v28, %v332_v27 }
 0x338   :  { %v339_v33 = vadd.f32 %v338_v30, %v325_v29 }
 0x33a   :  { %v341_v34 = vsub.f32 %v340_v32, %v339_v33 }
 0x33c   :  { %v342_v36 = vmul.f32 2.0, %v341_v34 }
 0x33e   :  { %v343_v37 = vsub.f32 %v360_v35, %v342_v36 }
 0x340   :  { %v345_v38 = vsel %vm344_vm2, %v343_v37, 0.0 }
 0x341   :  { %346 = vadd.xlane.f32.xlu1 %v345_v38 }
 0x3ce   :  { %v347_v39 = vpop.xlane.xlu1 %346 }
 0x3cf   :  { %351 = vst.msk [vmem:[%s742_s8] sm:$0xff] %vm350_vm4, %v347_v39 }

</bundles_post_ra>
